<compile_context>
chip_gen: v6e
topology: v6e:2x2x1
jax: 0.10.0
libtpu: 0.0.40
codegen_flags: <defaults>
</compile_context>

<pallas_src>
import functools

import jax
import jax.numpy as jnp
from jax import lax
from jax.experimental import pallas as pl
from jax.experimental.pallas import tpu as pltpu

_EPS = 1e-8


def _round_up(v, m):
    return (v + m - 1) // m * m


def _feddecorr_kernel(x_ref, out_ref,
                      sum_ref, sumsq_ref, mean_ref, invstd_ref, corr_ref,
                      *, n_actual, c_actual, tile_n, n_padded):
    p = pl.program_id(0)                      # 0 = stats pass, 1 = Gram pass
    i = pl.program_id(1)                      # N-tile index
    is_first = i == 0
    is_last = i == pl.num_programs(1) - 1

    # ----------------------- pass 0: column statistics ----------------------
    @pl.when(jnp.logical_and(p == 0, is_first))
    def _init_stats():
        sum_ref[...] = jnp.zeros_like(sum_ref)
        sumsq_ref[...] = jnp.zeros_like(sumsq_ref)

    @pl.when(p == 0)
    def _accum_stats():
        x = x_ref[...].astype(jnp.float32)
        # zero-padded rows/columns contribute nothing to either accumulator
        sum_ref[...] += jnp.sum(x, axis=0, keepdims=True)
        sumsq_ref[...] += jnp.sum(x * x, axis=0, keepdims=True)

    @pl.when(jnp.logical_and(p == 0, is_last))
    def _finalize_stats():
        n_f = jnp.float32(n_actual)
        mean = sum_ref[...] / n_f
        # unbiased variance (matches torch.var default, /(N-1))
        var = (sumsq_ref[...] - n_f * mean * mean) / jnp.float32(n_actual - 1)
        var = jnp.maximum(var, 0.0)           # guard tiny negative round-off
        mean_ref[...] = mean
        invstd_ref[...] = lax.rsqrt(_EPS + var)
        corr_ref[...] = jnp.zeros_like(corr_ref)

    # --------------------- pass 1: normalized Gram matrix -------------------
    @pl.when(p == 1)
    def _accum_gram():
        x = x_ref[...].astype(jnp.float32)
        xn = (x - mean_ref[...]) * invstd_ref[...]
        if n_padded != n_actual:
            # zero-padded rows are NOT zero after centering -> mask them out
            row = lax.broadcasted_iota(jnp.int32, xn.shape, 0) + i * tile_n
            xn = jnp.where(row < n_actual, xn, 0.0)
        mxu_dtype = jnp.bfloat16 if x_ref.dtype == jnp.bfloat16 else jnp.float32
        xn_mxu = xn.astype(mxu_dtype)
        # xn^T @ xn : contraction over the batch (tile_n) dimension on the MXU
        corr_ref[...] += lax.dot_general(
            xn_mxu, xn_mxu,
            dimension_numbers=(((0,), (0,)), ((), ())),
            preferred_element_type=jnp.float32,
        )

    @pl.when(jnp.logical_and(p == 1, is_last))
    def _finalize_loss():
        corr = corr_ref[...]
        c_pad = corr.shape[0]
        # single bool mask, built once at finalize (padded rows/cols are 0)
        diag = (lax.broadcasted_iota(jnp.int32, (c_pad, c_pad), 0) ==
                lax.broadcasted_iota(jnp.int32, (c_pad, c_pad), 1))
        off_sq_sum = jnp.sum(jnp.where(diag, 0.0, corr * corr))
        num_off = jnp.float32(c_actual * (c_actual - 1))
        out_ref[0, 0] = (off_sq_sum / num_off) / jnp.float32(n_actual)


def feddecorr_loss(x, *, tile_n=None):
    """FedDecorrLoss forward. x: (N, C). Returns a scalar float32 loss."""
    x = jnp.asarray(x)
    n, c = x.shape
    if n == 1:
        return jnp.float32(0.0)               # matches the PyTorch early-out

    # NOTE: for genuinely tiny inputs the pallas_call fixed overhead dominates;
    # a jitted pure-JAX version (see _reference) is then the better choice.

    c_pad = _round_up(c, 128)                 # lane-dense tiles / MXU output
    if tile_n is None:
        tile_n = 512 if n >= 512 else _round_up(n, 8)   # deep MXU contraction
    tile_n = max(8, _round_up(tile_n, 8))
    n_pad = _round_up(n, tile_n)
    n_tiles = n_pad // tile_n

    if (n_pad, c_pad) != (n, c):
        x = jnp.pad(x, ((0, n_pad - n), (0, c_pad - c)))

    kernel = functools.partial(
        _feddecorr_kernel,
        n_actual=n, c_actual=c, tile_n=tile_n, n_padded=n_pad)

    # VMEM budget: double-buffered x tiles + CxC accumulator + finalize temps.
    # TODO(synk): tile the CxC accumulator over column blocks for very large C
    # (C >= ~2048) so it also fits v7x's 64 MiB/TC VMEM and can use both TCs.
    x_bytes = jnp.dtype(x.dtype).itemsize
    need = (2 * tile_n * c_pad * x_bytes      # double-buffered input tile
            + 3 * c_pad * c_pad * 4           # Gram acc + finalize temporaries
            + 4 * 8 * c_pad * 4)              # (1, C) scratches (sublane pad)
    vmem_limit = int(min(max(2 * need, 32 * 1024 * 1024), 96 * 1024 * 1024))

    grid_spec = pltpu.PrefetchScalarGridSpec(
        num_scalar_prefetch=0,
        grid=(2, n_tiles),                    # (pass, N-tile), both sequential
        in_specs=[pl.BlockSpec((tile_n, c_pad), lambda p, i: (i, 0))],
        out_specs=pl.BlockSpec(memory_space=pltpu.MemorySpace.SMEM),
        scratch_shapes=[
            pltpu.VMEM((1, c_pad), jnp.float32),       # column sums
            pltpu.VMEM((1, c_pad), jnp.float32),       # column sums of squares
            pltpu.VMEM((1, c_pad), jnp.float32),       # mean
            pltpu.VMEM((1, c_pad), jnp.float32),       # 1/sqrt(eps + var)
            pltpu.VMEM((c_pad, c_pad), jnp.float32),   # Gram accumulator
        ],
    )

    out = pl.pallas_call(
        kernel,
        out_shape=jax.ShapeDtypeStruct((1, 1), jnp.float32),
        grid_spec=grid_spec,
        compiler_params=pltpu.CompilerParams(
            dimension_semantics=("arbitrary", "arbitrary"),
            vmem_limit_bytes=vmem_limit,
        ),
    )(x)
    return out[0, 0]


def _reference(x):
    # Pure-JAX mirror of the PyTorch module (used as a correctness check).
    x = jnp.asarray(x, dtype=jnp.float32)
    n, c = x.shape
    x = x - jnp.mean(x, axis=0, keepdims=True)
    x = x / jnp.sqrt(_EPS + jnp.var(x, axis=0, keepdims=True, ddof=1))
    corr = x.T @ x
    off = corr[~jnp.eye(c, dtype=bool)]
    return jnp.mean(off ** 2) / n


if __name__ == "__main__":
    key = jax.random.PRNGKey(0)
    k1, k2 = jax.random.split(key)

    # Small shape consistent with the module's (N, C) input.
    N, C = 8, 32
    x = jax.random.normal(k1, (N, C), dtype=jnp.float32)
    loss = jax.block_until_ready(feddecorr_loss(x))
    ref = jax.block_until_ready(_reference(x))
    assert jnp.allclose(loss, ref, rtol=1e-4, atol=1e-6), (loss, ref)

    # Ragged batch (N not a multiple of 8) exercises the padded-row mask path.
    x2 = jax.random.normal(k2, (13, C), dtype=jnp.float32)
    loss2 = jax.block_until_ready(feddecorr_loss(x2))
    ref2 = jax.block_until_ready(_reference(x2))
    assert jnp.allclose(loss2, ref2, rtol=1e-4, atol=1e-6), (loss2, ref2)

    # N == 1 early-out (PyTorch returns 0.0).
    assert float(feddecorr_loss(jnp.ones((1, C), jnp.float32))) == 0.0

    print("KERNEL_OK")
</pallas_src>

<mosaic_0001>
module attributes {stable_mosaic.version = 11 : i64} {
  func.func @_feddecorr_kernel(%arg0: i32, %arg1: i32, %arg2: memref<8x128xf32, #tpu.memory_space<vmem>>, %arg3: memref<1x1xf32, #tpu.memory_space<smem>>, %arg4: memref<1x128xf32, #tpu.memory_space<vmem>>, %arg5: memref<1x128xf32, #tpu.memory_space<vmem>>, %arg6: memref<1x128xf32, #tpu.memory_space<vmem>>, %arg7: memref<1x128xf32, #tpu.memory_space<vmem>>, %arg8: memref<128x128xf32, #tpu.memory_space<vmem>>) attributes {dimension_semantics = [#tpu.dimension_semantics<arbitrary>, #tpu.dimension_semantics<arbitrary>], iteration_bounds = array<i64: 2, 1>, scalar_prefetch = 0 : i64, scratch_operands = 5 : i64, tpu.core_type = #tpu.core_type<tc>, window_params = [{transform_indices = @transform_0, window_bounds = array<i64: 8, 128>}, {transform_indices = @transform_1, window_bounds = array<i64: 1, 1>}]} {
    %c0_i32 = arith.constant 0 : i32
    %0 = arith.cmpi eq, %arg1, %c0_i32 : i32
    %c0_i32_0 = arith.constant 0 : i32
    %1 = arith.cmpi eq, %arg1, %c0_i32_0 : i32
    %c0_i32_1 = arith.constant 0 : i32
    %2 = arith.cmpi eq, %arg0, %c0_i32_1 : i32
    %3 = arith.andi %2, %0 : i1
    %4 = arith.extui %3 : i1 to i32
    %c0_i32_2 = arith.constant 0 : i32
    %5 = arith.cmpi ne, %4, %c0_i32_2 : i32
    scf.if %5 {
      %cst = arith.constant 0.000000e+00 : f32
      %20 = vector.broadcast %cst : f32 to vector<1x128xf32>
      %c0 = arith.constant 0 : index
      %c0_10 = arith.constant 0 : index
      %21 = vector.load %arg4[%c0, %c0_10] : memref<1x128xf32, #tpu.memory_space<vmem>>, vector<1x128xf32>
      tpu.vector_store %arg4[%c0, %c0_10], %20 {strides = array<i32>} : memref<1x128xf32, #tpu.memory_space<vmem>>, vector<1x128xf32>,
      %cst_11 = arith.constant 0.000000e+00 : f32
      %22 = vector.broadcast %cst_11 : f32 to vector<1x128xf32>
      %c0_12 = arith.constant 0 : index
      %c0_13 = arith.constant 0 : index
      %23 = vector.load %arg5[%c0_12, %c0_13] : memref<1x128xf32, #tpu.memory_space<vmem>>, vector<1x128xf32>
      tpu.vector_store %arg5[%c0_12, %c0_13], %22 {strides = array<i32>} : memref<1x128xf32, #tpu.memory_space<vmem>>, vector<1x128xf32>,
    } else {
    }
    %c0_i32_3 = arith.constant 0 : i32
    %6 = arith.cmpi eq, %arg0, %c0_i32_3 : i32
    %7 = arith.extui %6 : i1 to i32
    %c0_i32_4 = arith.constant 0 : i32
    %8 = arith.cmpi ne, %7, %c0_i32_4 : i32
    scf.if %8 {
      %c0 = arith.constant 0 : index
      %c0_10 = arith.constant 0 : index
      %20 = vector.load %arg2[%c0, %c0_10] : memref<8x128xf32, #tpu.memory_space<vmem>>, vector<8x128xf32>
      %c0_11 = arith.constant 0 : index
      %c0_12 = arith.constant 0 : index
      %21 = vector.load %arg4[%c0_11, %c0_12] : memref<1x128xf32, #tpu.memory_space<vmem>>, vector<1x128xf32>
      %cst = arith.constant dense<0.000000e+00> : vector<128xf32>
      %22 = vector.multi_reduction <add>, %20, %cst [0] : vector<8x128xf32> to vector<128xf32>
      %23 = vector.shape_cast %22 : vector<128xf32> to vector<1x128xf32>
      %24 = arith.addf %21, %23 : vector<1x128xf32>
      %c0_13 = arith.constant 0 : index
      %c0_14 = arith.constant 0 : index
      %25 = vector.load %arg4[%c0_13, %c0_14] : memref<1x128xf32, #tpu.memory_space<vmem>>, vector<1x128xf32>
      tpu.vector_store %arg4[%c0_13, %c0_14], %24 {strides = array<i32>} : memref<1x128xf32, #tpu.memory_space<vmem>>, vector<1x128xf32>,
      %c0_15 = arith.constant 0 : index
      %c0_16 = arith.constant 0 : index
      %26 = vector.load %arg5[%c0_15, %c0_16] : memref<1x128xf32, #tpu.memory_space<vmem>>, vector<1x128xf32>
      %27 = arith.mulf %20, %20 : vector<8x128xf32>
      %cst_17 = arith.constant dense<0.000000e+00> : vector<128xf32>
      %28 = vector.multi_reduction <add>, %27, %cst_17 [0] : vector<8x128xf32> to vector<128xf32>
      %29 = vector.shape_cast %28 : vector<128xf32> to vector<1x128xf32>
      %30 = arith.addf %26, %29 : vector<1x128xf32>
      %c0_18 = arith.constant 0 : index
      %c0_19 = arith.constant 0 : index
      %31 = vector.load %arg5[%c0_18, %c0_19] : memref<1x128xf32, #tpu.memory_space<vmem>>, vector<1x128xf32>
      tpu.vector_store %arg5[%c0_18, %c0_19], %30 {strides = array<i32>} : memref<1x128xf32, #tpu.memory_space<vmem>>, vector<1x128xf32>,
    } else {
    }
    %c0_i32_5 = arith.constant 0 : i32
    %9 = arith.cmpi eq, %arg0, %c0_i32_5 : i32
    %10 = arith.andi %9, %1 : i1
    %11 = arith.extui %10 : i1 to i32
    %c0_i32_6 = arith.constant 0 : i32
    %12 = arith.cmpi ne, %11, %c0_i32_6 : i32
    scf.if %12 {
      %c0 = arith.constant 0 : index
      %c0_10 = arith.constant 0 : index
      %20 = vector.load %arg4[%c0, %c0_10] : memref<1x128xf32, #tpu.memory_space<vmem>>, vector<1x128xf32>
      %cst = arith.constant 8.000000e+00 : f32
      %21 = vector.broadcast %cst : f32 to vector<1x128xf32>
      %22 = arith.divf %20, %21 : vector<1x128xf32>
      %c0_11 = arith.constant 0 : index
      %c0_12 = arith.constant 0 : index
      %23 = vector.load %arg5[%c0_11, %c0_12] : memref<1x128xf32, #tpu.memory_space<vmem>>, vector<1x128xf32>
      %cst_13 = arith.constant 8.000000e+00 : f32
      %24 = vector.broadcast %cst_13 : f32 to vector<1x128xf32>
      %25 = arith.mulf %24, %22 : vector<1x128xf32>
      %26 = arith.mulf %25, %22 : vector<1x128xf32>
      %27 = arith.subf %23, %26 : vector<1x128xf32>
      %cst_14 = arith.constant 7.000000e+00 : f32
      %28 = vector.broadcast %cst_14 : f32 to vector<1x128xf32>
      %29 = arith.divf %27, %28 : vector<1x128xf32>
      %cst_15 = arith.constant 0.000000e+00 : f32
      %30 = vector.broadcast %cst_15 : f32 to vector<1x128xf32>
      %31 = arith.maximumf %29, %30 : vector<1x128xf32>
      %c0_16 = arith.constant 0 : index
      %c0_17 = arith.constant 0 : index
      %32 = vector.load %arg6[%c0_16, %c0_17] : memref<1x128xf32, #tpu.memory_space<vmem>>, vector<1x128xf32>
      tpu.vector_store %arg6[%c0_16, %c0_17], %22 {strides = array<i32>} : memref<1x128xf32, #tpu.memory_space<vmem>>, vector<1x128xf32>,
      %cst_18 = arith.constant 9.99999993E-9 : f32
      %33 = vector.broadcast %cst_18 : f32 to vector<1x128xf32>
      %34 = arith.addf %33, %31 : vector<1x128xf32>
      %35 = math.rsqrt %34 : vector<1x128xf32>
      %c0_19 = arith.constant 0 : index
      %c0_20 = arith.constant 0 : index
      %36 = vector.load %arg7[%c0_19, %c0_20] : memref<1x128xf32, #tpu.memory_space<vmem>>, vector<1x128xf32>
      tpu.vector_store %arg7[%c0_19, %c0_20], %35 {strides = array<i32>} : memref<1x128xf32, #tpu.memory_space<vmem>>, vector<1x128xf32>,
      %cst_21 = arith.constant 0.000000e+00 : f32
      %37 = vector.broadcast %cst_21 : f32 to vector<128x128xf32>
      %c0_22 = arith.constant 0 : index
      %c0_23 = arith.constant 0 : index
      %38 = vector.load %arg8[%c0_22, %c0_23] : memref<128x128xf32, #tpu.memory_space<vmem>>, vector<128x128xf32>
      tpu.vector_store %arg8[%c0_22, %c0_23], %37 {strides = array<i32>} : memref<128x128xf32, #tpu.memory_space<vmem>>, vector<128x128xf32>,
    } else {
    }
    %c1_i32 = arith.constant 1 : i32
    %13 = arith.cmpi eq, %arg0, %c1_i32 : i32
    %14 = arith.extui %13 : i1 to i32
    %c0_i32_7 = arith.constant 0 : i32
    %15 = arith.cmpi ne, %14, %c0_i32_7 : i32
    scf.if %15 {
      %c0 = arith.constant 0 : index
      %c0_10 = arith.constant 0 : index
      %20 = vector.load %arg2[%c0, %c0_10] : memref<8x128xf32, #tpu.memory_space<vmem>>, vector<8x128xf32>
      %c0_11 = arith.constant 0 : index
      %c0_12 = arith.constant 0 : index
      %21 = vector.load %arg6[%c0_11, %c0_12] : memref<1x128xf32, #tpu.memory_space<vmem>>, vector<1x128xf32>
      %22 = vector.broadcast %21 : vector<1x128xf32> to vector<8x128xf32>
      %23 = arith.subf %20, %22 : vector<8x128xf32>
      %c0_13 = arith.constant 0 : index
      %c0_14 = arith.constant 0 : index
      %24 = vector.load %arg7[%c0_13, %c0_14] : memref<1x128xf32, #tpu.memory_space<vmem>>, vector<1x128xf32>
      %25 = vector.broadcast %24 : vector<1x128xf32> to vector<8x128xf32>
      %26 = arith.mulf %23, %25 : vector<8x128xf32>
      %c0_15 = arith.constant 0 : index
      %c0_16 = arith.constant 0 : index
      %27 = vector.load %arg8[%c0_15, %c0_16] : memref<128x128xf32, #tpu.memory_space<vmem>>, vector<128x128xf32>
      %cst = arith.constant dense<0.000000e+00> : vector<128x128xf32>
      %28 = tpu.matmul %26, %26, %cst {dimension_numbers = #tpu.dot_dimension_numbers<[0], [0], [1], [1], [0, 1, 1, 1], [], []>} : vector<8x128xf32>, vector<8x128xf32>, vector<128x128xf32> -> vector<128x128xf32>
      %29 = arith.addf %27, %28 : vector<128x128xf32>
      %c0_17 = arith.constant 0 : index
      %c0_18 = arith.constant 0 : index
      %30 = vector.load %arg8[%c0_17, %c0_18] : memref<128x128xf32, #tpu.memory_space<vmem>>, vector<128x128xf32>
      tpu.vector_store %arg8[%c0_17, %c0_18], %29 {strides = array<i32>} : memref<128x128xf32, #tpu.memory_space<vmem>>, vector<128x128xf32>,
    } else {
    }
    %c1_i32_8 = arith.constant 1 : i32
    %16 = arith.cmpi eq, %arg0, %c1_i32_8 : i32
    %17 = arith.andi %16, %1 : i1
    %18 = arith.extui %17 : i1 to i32
    %c0_i32_9 = arith.constant 0 : i32
    %19 = arith.cmpi ne, %18, %c0_i32_9 : i32
    scf.if %19 {
      %c0 = arith.constant 0 : index
      %c0_10 = arith.constant 0 : index
      %20 = vector.load %arg8[%c0, %c0_10] : memref<128x128xf32, #tpu.memory_space<vmem>>, vector<128x128xf32>
      %21 = tpu.iota {dimensions = array<i32: 0>} : vector<128x128xi32>
      %22 = tpu.iota {dimensions = array<i32: 1>} : vector<128x128xi32>
      %23 = arith.cmpi eq, %21, %22 : vector<128x128xi32>
      %24 = arith.mulf %20, %20 : vector<128x128xf32>
      %cst = arith.constant 0.000000e+00 : f32
      %25 = vector.broadcast %cst : f32 to vector<128x128xf32>
      %26 = arith.select %23, %25, %24 : vector<128x128xi1>, vector<128x128xf32>
      %27 = vector.shape_cast %26 : vector<128x128xf32> to vector<1x128x128xf32>
      %cst_11 = arith.constant dense<0.000000e+00> : vector<1xf32>
      %28 = vector.multi_reduction <add>, %27, %cst_11 [1, 2] : vector<1x128x128xf32> to vector<1xf32>
      %29 = vector.shape_cast %28 : vector<1xf32> to vector<1x1x1xf32>
      %30 = vector.extract %29[0, 0, 0] : f32 from vector<1x1x1xf32>
      %cst_12 = arith.constant 9.920000e+02 : f32
      %31 = arith.divf %30, %cst_12 : f32
      %cst_13 = arith.constant 8.000000e+00 : f32
      %32 = arith.divf %31, %cst_13 : f32
      %c0_14 = arith.constant 0 : index
      %c0_15 = arith.constant 0 : index
      %33 = memref.load %arg3[%c0_14, %c0_15] : memref<1x1xf32, #tpu.memory_space<smem>>
      memref.store %32, %arg3[%c0_14, %c0_15] : memref<1x1xf32, #tpu.memory_space<smem>>
    } else {
    }
    return
  }
  func.func @transform_0(%arg0: i32, %arg1: i32) -> (i32, i32) {
    %c0_i32 = arith.constant 0 : i32
    %c0_i32_0 = arith.constant 0 : i32
    return %arg1, %c0_i32 : i32, i32
  }
  func.func @transform_1(%arg0: i32, %arg1: i32) -> (i32, i32) {
    %c0_i32 = arith.constant 0 : i32
    %c0_i32_0 = arith.constant 0 : i32
    %c0_i32_1 = arith.constant 0 : i32
    return %c0_i32, %c0_i32_0 : i32, i32
  }
}

</mosaic_0001>

<bundles_post_ra>
// kernel: tpu_custom_call.1
= control target key start
LH: loop header
LB: loop body
LE: loop exit
PB: predicated region body
PF: predicated region fallthrough
CT: control target
= control target key end

     0   :  { %6 = vsyncpa [#allocation8], 0  ;;  %s977_s0 = inlined_call_operand.hbm [shape: f32[8,128], index: 0, kind: input, shape index: {}]   ;;  %s978_s1 = inlined_call_operand.hbm [shape: f32[1,1], index: 1, kind: output, shape index: {}]  }
   0x1   :  { %7 = vsyncpa [#allocation9], 0  ;;  %s857_s6 = smov 0   ;;  %s859_s7 = smov 0  }
   0x2   :  { %s861_s8 = smov 0  }
   0x3 LB: > { %s648_s9 = sadd.s32 4294967295, %s841_s8   ;;  %s25_s10 = sadd.s32 1, %s837_s7  ;;  %s841_s8 = sphi %s861_s8, %s13_s8   ;;  %s837_s7 = sphi %s859_s7, %s982_s7   ;;  %s833_s6 = sphi %s857_s6, %s981_s6  }
   0x4   : > { %p27_p0 = scmp.ge.s32.totalorder %s25_s10, 2  ;;  %p649_p1 = scmp.ge.s32.totalorder %s841_s8, 1 }
   0x5   : > { %p77_p2 = scmp.lt.s32.totalorder %s841_s8, 3  ;;  %p884_p4 = scmp.eq.s32.totalorder %s648_s9, 0 }
   0x6   : > { %s984_s10 = smov (%p27_p0, %s25_s10), 0  ;;  %s843_s13 = smov [#allocation7]  }
   0x7   : > { %p878_p3 = pnand %p649_p1, %p77_p2  ;;  %s92_s14 = sshll.u32 %s843_s13, 4  ;;  %s93_s14 = int_to_ptr.vmem [resolvable:$true] %s92_s14 }
   0x8   : > { %s786_s15 = scalar_lea.vmem %s93_s14, 128  ;;  %p794_p11 = scmp.lt.s32.totalorder %s93_s14, %s93_s14 }
   0x9   : > { %p736_p5 = pneg %p878_p3  ;;  %p787_p8 = scmp.ne.s32.totalorder %s93_s14, %s786_s15 }
   0xa   : > { %p795_p12 = scmp.lt.s32.totalorder %s786_s15, %s786_s15 }
   0xb   : > { %p737_p6 = pnand %p884_p4, %p736_p5 }
   0xc   : > { %p796_p13 = por %p795_p12, %p794_p11 }
   0xd   : > { %p777_p7 = pneg %p737_p6 }
   0xf   : > { %p789_p9 = pnand %p787_p8, %p777_p7 }
  0x11   : > { %p790_p10 = pneg %p789_p9 }
  0x13   : > { %p797_p0 = pnand %p796_p13, %p790_p10 }
  0x15   : > { %800 = shalt.err (!%p797_p0)
}
  0x16   : > { %739 = dma.hbm_to_vmem [thread:$0]  (!%p737_p6), %s977_s0, 128, %s93_s14, [#allocation8]  }
  0x17   : > { %105 = sbr.rel (%p878_p3) target bundleno = 739 (0x2e3), region = 24 }
  0x1c   : > { %824 = dma.done.wait (%p884_p4), [#allocation8], 128  }
  0x1d   : > { %826 = vsyncadd (%p884_p4), [#allocation8], 4294967168  ;;  %p116_p1 = scmp.eq.s32.totalorder %s833_s6, 0 }
  0x1e   : > { %v844_v0 = vmov (%p116_p1), 0.0  }
  0x1f   : > { %120 = sbr.rel (!%p116_p1) target bundleno = 36 (0x24), region = 32  ;;  %121 = vst [vmem:[#allocation2] sm:$0x1] (%p116_p1), %v844_v0  ;;  %122 = vst [vmem:[#allocation3] sm:$0x1] (%p116_p1), %v844_v0 }
  0x24 PF: > { %p654_p2 = scmp.ne.s32.totalorder %s833_s6, 0 }
  0x26   : > { %125 = sbr.rel (%p654_p2) target bundleno = 61 (0x3d), region = 36 }
  0x2b   : > { %v126_v1 = vld [vmem:[#allocation7] sm:$0xff]  ;;  %v127_v12 = vld [vmem:[#allocation2] sm:$0x1]  ;;  %v136_v15 = vld [vmem:[#allocation3] sm:$0x1] }
  0x2c   : > { %v128_v2 = vrot.slane %v126_v1, 4  ;;  %v137_v3 = vmul.f32 %v126_v1, %v126_v1 }
  0x2e   : > { %v129_v4 = vadd.f32 %v128_v2, %v126_v1  ;;  %v138_v5 = vrot.slane %v137_v3, 4 }
  0x30   : > { %v130_v6 = vrot.slane %v129_v4, 2  ;;  %v139_v7 = vadd.f32 %v138_v5, %v137_v3 }
  0x32   : > { %v131_v8 = vadd.f32 %v130_v6, %v129_v4  ;;  %v140_v9 = vrot.slane %v139_v7, 2 }
  0x34   : > { %v132_v10 = vrot.slane %v131_v8, 1  ;;  %v141_v11 = vadd.f32 %v140_v9, %v139_v7 }
  0x36   : > { %v133_v13 = vadd.f32 %v132_v10, %v131_v8  ;;  %v142_v14 = vrot.slane %v141_v11, 1 }
  0x38   : > { %v134_v16 = vadd.f32 %v133_v13, %v127_v12  ;;  %v143_v17 = vadd.f32 %v142_v14, %v141_v11 }
  0x3a   : > { %135 = vst [vmem:[#allocation2] sm:$0x1] %v134_v16  ;;  %v144_v18 = vadd.f32 %v143_v17, %v136_v15 }
  0x3c   : > { %145 = vst [vmem:[#allocation3] sm:$0x1] %v144_v18 }
  0x3d PF: > { %147 = sbr.rel (!%p116_p1) target bundleno = 95 (0x5f), region = 40  ;;  %v845_v21 = vmov (%p116_p1), 0.0  }
  0x3e   : > { %162 = vst [vmem:[#allocation6 + $0x30] sm:$0xff] (%p116_p1), %v845_v21  ;;  %163 = vst [vmem:[#allocation6] sm:$0xff] (%p116_p1), %v845_v21 }
  0x3f   : > { %164 = vst [vmem:[#allocation6 + $0x58] sm:$0xff] (%p116_p1), %v845_v21  ;;  %165 = vst [vmem:[#allocation6 + $0x18] sm:$0xff] (%p116_p1), %v845_v21 }
  0x40   : > { %166 = vst [vmem:[#allocation6 + $0x50] sm:$0xff] (%p116_p1), %v845_v21  ;;  %167 = vst [vmem:[#allocation6 + $0x68] sm:$0xff] (%p116_p1), %v845_v21 }
  0x41   : > { %v148_v19 = vld [vmem:[#allocation2] sm:$0x1] (%p116_p1)  ;;  %168 = vst [vmem:[#allocation6 + $0x8] sm:$0xff] (%p116_p1), %v845_v21  ;;  %169 = vst [vmem:[#allocation6 + $0x48] sm:$0xff] (%p116_p1), %v845_v21 }
  0x42   : > { %v150_v20 = vmul.f32 0.125, %v148_v19  ;;  %170 = vst [vmem:[#allocation6 + $0x40] sm:$0xff] %v845_v21  ;;  %171 = vst [vmem:[#allocation6 + $0x20] sm:$0xff] %v845_v21 }
  0x43   : > { %172 = vst [vmem:[#allocation6 + $0x10] sm:$0xff] %v845_v21  ;;  %173 = vst [vmem:[#allocation6 + $0x38] sm:$0xff] %v845_v21  ;;  %v151_v23 = vld [vmem:[#allocation3] sm:$0x1] }
  0x44   : > { %174 = vst [vmem:[#allocation6 + $0x60] sm:$0xff] %v845_v21  ;;  %175 = vst [vmem:[#allocation6 + $0x70] sm:$0xff] %v845_v21  ;;  %v152_v22 = vmul.f32 8.0, %v150_v20 }
  0x45   : > { %176 = vst [vmem:[#allocation6 + $0x78] sm:$0xff] %v845_v21  ;;  %177 = vst [vmem:[#allocation6 + $0x28] sm:$0xff] %v845_v21 }
  0x46   : > { %158 = vst [vmem:[#allocation4] sm:$0x1] %v150_v20  ;;  %v153_v24 = vmul.f32 %v152_v22, %v150_v20 }
  0x48   : > { %v154_v25 = vsub.f32 %v151_v23, %v153_v24 }
  0x4a   : > { %v156_v26 = vmul.f32 0.14285715, %v154_v25 }
  0x4c   : > { %v157_v27 = vmax.f32 %v156_v26, 0.0 }
  0x4e   : > { %v159_v28 = vadd.f32 1e-08, %v157_v27 }
  0x50   : > { %773 = vrsqrt.f32 %v159_v28 }
  0x5d   : > { %v774_v29 = vpop.eup %773 }
  0x5e   : > { %161 = vst [vmem:[#allocation5] sm:$0x1] %v774_v29 }
  0x5f PF: > { %p178_p3 = scmp.eq.s32.totalorder %s833_s6, 1  ;;  %p655_p4 = scmp.ne.s32.totalorder %s833_s6, 1 }
  0x61   : > { %181 = sbr.rel (%p655_p4) target bundleno = 490 (0x1ea), region = 44 }
  0x66   : > { %v182_v30 = vld [vmem:[#allocation7] sm:$0xff]  ;;  %v656_v31 = vld [vmem:[#allocation4] ss:$0 sm:$0xff]  ;;  %v657_v32 = vld [vmem:[#allocation5] ss:$0 sm:$0xff]  ;;  %vm247_vm0 = vcmask 64512  }
  0x67   : > { %v190_v33 = vsub.f32 %v182_v30, %v656_v31  ;;  %v200_v51 = vld [vmem:[#allocation6] sm:$0xff]  ;;  %v199_v53 = vld [vmem:[#allocation6 + $0x30] sm:$0xff]  ;;  %v202_v57 = vld [vmem:[#allocation6 + $0x18] sm:$0xff] }
  0x68   : > { %v201_v59 = vld [vmem:[#allocation6 + $0x58] sm:$0xff]  ;;  %v204_v63 = vld [vmem:[#allocation6 + $0x68] sm:$0xff]  ;;  %v203_v1 = vld [vmem:[#allocation6 + $0x50] sm:$0xff] }
  0x69   : > { %v198_v34 = vmul.f32 %v657_v32, %v190_v33  ;;  %v206_v5 = vld [vmem:[#allocation6 + $0x48] sm:$0xff]  ;;  %v208_v11 = vld [vmem:[#allocation6 + $0x20] sm:$0xff]  ;;  %v210_v17 = vld [vmem:[#allocation6 + $0x38] sm:$0xff] }
  0x6a   : > { %v205_v7 = vld [vmem:[#allocation6 + $0x8] sm:$0xff]  ;;  %v207_v13 = vld [vmem:[#allocation6 + $0x40] sm:$0xff]  ;;  %v209_v19 = vld [vmem:[#allocation6 + $0x10] sm:$0xff] }
  0x6b   : > { %215 = vxpose.xlu0.b32.start.end [1/1] (short) %v198_v34, 128  ;;  %698 = vmatprep.subr.mxu0 %v198_v34  ;;  %v212_v23 = vld [vmem:[#allocation6 + $0x70] sm:$0xff]  ;;  %v211_v25 = vld [vmem:[#allocation6 + $0x60] sm:$0xff]  ;;  %v214_v29 = vld [vmem:[#allocation6 + $0x28] sm:$0xff] }
  0x6c   : > { %699 = vmatpush3.msra.mxu0 %v198_v34  ;;  %724 = vmatprep.subr.mxu1 %v198_v34  ;;  %v213_v31 = vld [vmem:[#allocation6 + $0x78] sm:$0xff] }
  0x6d   : > { %725 = vmatpush3.msra.mxu1 %v198_v34 }
  0xe7   : > { %v231_v35 = vpop.trf.xlu0 }
  0xe8   : > { %700 = vmatprep.mubr.msk.f32.mxu0 %vm247_vm0, %v231_v35 }
  0xeb   : > { %v232_v36 = vpop.trf.xlu0 }
  0xec   : > { %701 = vmatmul.mubr.msk.f32.vlgmr.msra.gmra.mxu0 %vm247_vm0, %v232_v36 }
  0xef   : > { %v233_v37 = vpop.trf.xlu0 }
  0xf0   : > { %703 = vmatprep.mubr.msk.f32.mxu0 %vm247_vm0, %v233_v37 }
  0xf3   : > { %v234_v38 = vpop.trf.xlu0 }
  0xf4   : > { %704 = vmatmul.mubr.msk.f32.gmra.mxu0 %vm247_vm0, %v234_v38 }
  0xf7   : > { %v235_v39 = vpop.trf.xlu0 }
  0xf8   : > { %706 = vmatprep.mubr.msk.f32.mxu0 %vm247_vm0, %v235_v39 }
  0xfb   : > { %v236_v40 = vpop.trf.xlu0 }
  0xfc   : > { %707 = vmatmul.mubr.msk.f32.gmra.mxu0 %vm247_vm0, %v236_v40 }
  0xff   : > { %v237_v41 = vpop.trf.xlu0 }
 0x100   : > { %709 = vmatprep.mubr.msk.f32.mxu0 %vm247_vm0, %v237_v41 }
 0x103   : > { %v238_v42 = vpop.trf.xlu0 }
 0x104   : > { %710 = vmatmul.mubr.msk.f32.gmra.mxu0 %vm247_vm0, %v238_v42 }
 0x107   : > { %v239_v43 = vpop.trf.xlu0 }
 0x108   : > { %712 = vmatprep.mubr.msk.f32.mxu1 %vm247_vm0, %v239_v43 }
 0x10b   : > { %v240_v44 = vpop.trf.xlu0 }
 0x10c   : > { %713 = vmatmul.mubr.msk.f32.vlgmr.msra.gmra.mxu1 %vm247_vm0, %v240_v44 }
 0x10f   : > { %v241_v45 = vpop.trf.xlu0 }
 0x110   : > { %715 = vmatprep.mubr.msk.f32.mxu1 %vm247_vm0, %v241_v45 }
 0x113   : > { %v242_v46 = vpop.trf.xlu0 }
 0x114   : > { %716 = vmatmul.mubr.msk.f32.gmra.mxu1 %vm247_vm0, %v242_v46 }
 0x117   : > { %v243_v47 = vpop.trf.xlu0 }
 0x118   : > { %718 = vmatprep.mubr.msk.f32.mxu1 %vm247_vm0, %v243_v47 }
 0x11b   : > { %v244_v48 = vpop.trf.xlu0 }
 0x11c   : > { %719 = vmatmul.mubr.msk.f32.gmra.mxu1 %vm247_vm0, %v244_v48 }
 0x11f   : > { %v245_v49 = vpop.trf.xlu0 }
 0x120   : > { %721 = vmatprep.mubr.msk.f32.mxu1 %vm247_vm0, %v245_v49 }
 0x123   : > { %v246_v50 = vpop.trf.xlu0 }
 0x124   : > { %722 = vmatmul.mubr.msk.f32.gmra.mxu1 %vm247_vm0, %v246_v50 }
 0x1ac   : > { %v702_v52 = vpop.f32.mrf.mxu0 }
 0x1ad   : > { %v442_v54 = vadd.f32 %v702_v52, %v200_v51 }
 0x1ae   : > { %v362_v55 = vpop.f32.mrf.mxu0 }
 0x1af   : > { %458 = vst [vmem:[#allocation6] sm:$0xff] %v442_v54  ;;  %v441_v56 = vadd.f32 %v362_v55, %v199_v53 }
 0x1b1   : > { %457 = vst [vmem:[#allocation6 + $0x30] sm:$0xff] %v441_v56 }
 0x1b4   : > { %v705_v58 = vpop.f32.mrf.mxu0 }
 0x1b5   : > { %v444_v60 = vadd.f32 %v705_v58, %v202_v57 }
 0x1b6   : > { %v372_v61 = vpop.f32.mrf.mxu0 }
 0x1b7   : > { %460 = vst [vmem:[#allocation6 + $0x18] sm:$0xff] %v444_v60  ;;  %v443_v62 = vadd.f32 %v372_v61, %v201_v59 }
 0x1b9   : > { %459 = vst [vmem:[#allocation6 + $0x58] sm:$0xff] %v443_v62 }
 0x1bc   : > { %v708_v0 = vpop.f32.mrf.mxu0 }
 0x1bd   : > { %v446_v2 = vadd.f32 %v708_v0, %v204_v63 }
 0x1be   : > { %v382_v3 = vpop.f32.mrf.mxu0 }
 0x1bf   : > { %462 = vst [vmem:[#allocation6 + $0x68] sm:$0xff] %v446_v2  ;;  %v445_v4 = vadd.f32 %v382_v3, %v203_v1 }
 0x1c1   : > { %461 = vst [vmem:[#allocation6 + $0x50] sm:$0xff] %v445_v4 }
 0x1c4   : > { %v711_v6 = vpop.f32.mrf.mxu0 }
 0x1c5   : > { %v448_v8 = vadd.f32 %v711_v6, %v206_v5 }
 0x1c6   : > { %v392_v9 = vpop.f32.mrf.mxu0 }
 0x1c7   : > { %464 = vst [vmem:[#allocation6 + $0x48] sm:$0xff] %v448_v8  ;;  %v447_v10 = vadd.f32 %v392_v9, %v205_v7 }
 0x1c9   : > { %463 = vst [vmem:[#allocation6 + $0x8] sm:$0xff] %v447_v10 }
 0x1cc   : > { %v714_v12 = vpop.f32.mrf.mxu1 }
 0x1cd   : > { %v450_v14 = vadd.f32 %v714_v12, %v208_v11 }
 0x1ce   : > { %v402_v15 = vpop.f32.mrf.mxu1 }
 0x1cf   : > { %466 = vst [vmem:[#allocation6 + $0x20] sm:$0xff] %v450_v14  ;;  %v449_v16 = vadd.f32 %v402_v15, %v207_v13 }
 0x1d1   : > { %465 = vst [vmem:[#allocation6 + $0x40] sm:$0xff] %v449_v16 }
 0x1d4   : > { %v717_v18 = vpop.f32.mrf.mxu1 }
 0x1d5   : > { %v452_v20 = vadd.f32 %v717_v18, %v210_v17 }
 0x1d6   : > { %v412_v21 = vpop.f32.mrf.mxu1 }
 0x1d7   : > { %468 = vst [vmem:[#allocation6 + $0x38] sm:$0xff] %v452_v20  ;;  %v451_v22 = vadd.f32 %v412_v21, %v209_v19 }
 0x1d9   : > { %467 = vst [vmem:[#allocation6 + $0x10] sm:$0xff] %v451_v22 }
 0x1dc   : > { %v720_v24 = vpop.f32.mrf.mxu1 }
 0x1dd   : > { %v454_v26 = vadd.f32 %v720_v24, %v212_v23 }
 0x1de   : > { %v422_v27 = vpop.f32.mrf.mxu1 }
 0x1df   : > { %470 = vst [vmem:[#allocation6 + $0x70] sm:$0xff] %v454_v26  ;;  %v453_v28 = vadd.f32 %v422_v27, %v211_v25 }
 0x1e1   : > { %469 = vst [vmem:[#allocation6 + $0x60] sm:$0xff] %v453_v28 }
 0x1e4   : > { %v723_v30 = vpop.f32.mrf.mxu1 }
 0x1e5   : > { %v456_v32 = vadd.f32 %v723_v30, %v214_v29 }
 0x1e6   : > { %v432_v33 = vpop.f32.mrf.mxu1 }
 0x1e7   : > { %472 = vst [vmem:[#allocation6 + $0x28] sm:$0xff] %v456_v32  ;;  %v455_v34 = vadd.f32 %v432_v33, %v213_v31 }
 0x1e9   : > { %471 = vst [vmem:[#allocation6 + $0x78] sm:$0xff] %v455_v34 }
 0x1ea PF: > { %476 = sbr.rel (!%p178_p3) target bundleno = 733 (0x2dd), region = 48  ;;  %v493_v35 = vlaneseq (%p178_p3)  ;;  %v477_v37 = vld [vmem:[#allocation6 + $0x30] sm:$0xff] (%p178_p3)  ;;  %v478_v38 = vld [vmem:[#allocation6] sm:$0xff] (%p178_p3)  ;;  %v479_v41 = vld [vmem:[#allocation6 + $0x58] sm:$0xff] (%p178_p3) }
 0x1eb   : > { %v528_v43 = vmul.f32 (%p178_p3), %v477_v37, %v477_v37  ;;  %v529_v44 = vmul.f32 (%p178_p3), %v478_v38, %v478_v38  ;;  %v480_v45 = vld [vmem:[#allocation6 + $0x18] sm:$0xff] (%p178_p3)  ;;  %v530_v47 = vmul.f32 (%p178_p3), %v479_v41, %v479_v41  ;;  %v481_v48 = vld [vmem:[#allocation6 + $0x50] sm:$0xff] (%p178_p3)  ;;  %v482_v53 = vld [vmem:[#allocation6 + $0x68] sm:$0xff] (%p178_p3) }
 0x1ec   : > { %v927_v36 = vshrl.u32 (%p178_p3), %v493_v35, 7  ;;  %v930_v40 = vand.u32 (%p178_p3), 127, %v493_v35  ;;  %v531_v50 = vmul.f32 (%p178_p3), %v480_v45, %v480_v45  ;;  %v532_v55 = vmul.f32 (%p178_p3), %v481_v48, %v481_v48  ;;  %v483_v57 = vld [vmem:[#allocation6 + $0x8] sm:$0xff] (%p178_p3)  ;;  %v485_v3 = vld [vmem:[#allocation6 + $0x40] sm:$0xff] (%p178_p3)  ;;  %v487_v13 = vld [vmem:[#allocation6 + $0x10] sm:$0xff] (%p178_p3) }
 0x1ed   : > { %v533_v60 = vmul.f32 (%p178_p3), %v482_v53, %v482_v53  ;;  %v484_v62 = vld [vmem:[#allocation6 + $0x48] sm:$0xff] (%p178_p3)  ;;  %v534_v1 = vmul.f32 (%p178_p3), %v483_v57, %v483_v57  ;;  %v486_v8 = vld [vmem:[#allocation6 + $0x20] sm:$0xff] (%p178_p3)  ;;  %v536_v11 = vmul.f32 (%p178_p3), %v485_v3, %v485_v3  ;;  %v488_v18 = vld [vmem:[#allocation6 + $0x38] sm:$0xff] (%p178_p3)  ;;  %v538_v21 = vmul.f32 (%p178_p3), %v487_v13, %v487_v13 }
 0x1ee   : > { %v495_v39 = vadd.s32 (%p178_p3), 8, %v927_v36  ;;  %v496_v42 = vadd.s32 (%p178_p3), 16, %v927_v36  ;;  %v497_v46 = vadd.s32 (%p178_p3), 24, %v927_v36  ;;  %vm512_vm1 = vcmp.eq.s32.totalorder (%p178_p3), %v927_v36, %v930_v40  ;;  %v489_v23 = vld [vmem:[#allocation6 + $0x60] sm:$0xff] (%p178_p3)  ;;  %v490_v28 = vld [vmem:[#allocation6 + $0x70] sm:$0xff] (%p178_p3) }
 0x1ef   : > { %v498_v49 = vadd.s32 32, %v927_v36  ;;  %v544_v51 = vsel %vm512_vm1, 0.0, %v528_v43  ;;  %v499_v54 = vadd.s32 40, %v927_v36  ;;  %v500_v58 = vadd.s32 48, %v927_v36 }
 0x1f0   : > { %vm513_vm2 = vcmp.eq.s32.totalorder %v495_v39, %v930_v40  ;;  %vm514_vm3 = vcmp.eq.s32.totalorder %v496_v42, %v930_v40  ;;  %vm515_vm4 = vcmp.eq.s32.totalorder %v497_v46, %v930_v40  ;;  %v501_v63 = vadd.s32 56, %v927_v36  ;;  %v491_v33 = vld [vmem:[#allocation6 + $0x78] sm:$0xff]  ;;  %v492_v39 = vld [vmem:[#allocation6 + $0x28] sm:$0xff] }
 0x1f1   : > { %v545_v52 = vsel %vm513_vm2, 0.0, %v529_v44  ;;  %v546_v56 = vsel %vm514_vm3, 0.0, %v530_v47  ;;  %vm516_vm5 = vcmp.eq.s32.totalorder %v498_v49, %v930_v40  ;;  %v547_v61 = vsel %vm515_vm4, 0.0, %v531_v50 }
 0x1f2   : > { %v560_v59 = vadd.f32 %v545_v52, %v544_v51  ;;  %vm517_vm6 = vcmp.eq.s32.totalorder %v499_v54, %v930_v40  ;;  %v548_v2 = vsel %vm516_vm5, 0.0, %v532_v55  ;;  %v502_v4 = vadd.s32 64, %v927_v36 }
 0x1f3   : > { %vm518_vm7 = vcmp.eq.s32.totalorder %v500_v58, %v930_v40  ;;  %v535_v6 = vmul.f32 %v484_v62, %v484_v62  ;;  %v549_v7 = vsel %vm517_vm6, 0.0, %v533_v60  ;;  %v503_v9 = vadd.s32 72, %v927_v36 }
 0x1f4   : > { %v561_v0 = vadd.f32 %v560_v59, %v546_v56  ;;  %vm519_vm8 = vcmp.eq.s32.totalorder %v501_v63, %v930_v40  ;;  %v550_v12 = vsel %vm518_vm7, 0.0, %v534_v1  ;;  %v504_v14 = vadd.s32 80, %v927_v36 }
 0x1f5   : > { %vm520_vm9 = vcmp.eq.s32.totalorder %v502_v4, %v930_v40  ;;  %v537_v16 = vmul.f32 %v486_v8, %v486_v8  ;;  %v551_v17 = vsel %vm519_vm8, 0.0, %v535_v6  ;;  %v505_v19 = vadd.s32 88, %v927_v36 }
 0x1f6   : > { %v562_v5 = vadd.f32 %v561_v0, %v547_v61  ;;  %vm521_vm10 = vcmp.eq.s32.totalorder %v503_v9, %v930_v40  ;;  %v552_v22 = vsel %vm520_vm9, 0.0, %v536_v11  ;;  %v506_v24 = vadd.s32 96, %v927_v36 }
 0x1f7   : > { %vm522_vm11 = vcmp.eq.s32.totalorder %v504_v14, %v930_v40  ;;  %v539_v26 = vmul.f32 %v488_v18, %v488_v18  ;;  %v553_v27 = vsel %vm521_vm10, 0.0, %v537_v16  ;;  %v507_v29 = vadd.s32 104, %v927_v36 }
 0x1f8   : > { %v563_v10 = vadd.f32 %v562_v5, %v548_v2  ;;  %vm523_vm12 = vcmp.eq.s32.totalorder %v505_v19, %v930_v40  ;;  %v540_v31 = vmul.f32 %v489_v23, %v489_v23  ;;  %v554_v32 = vsel %vm522_vm11, 0.0, %v538_v21 }
 0x1f9   : > { %v508_v34 = vadd.s32 112, %v927_v36  ;;  %vm524_vm13 = vcmp.eq.s32.totalorder %v506_v24, %v930_v40  ;;  %v541_v37 = vmul.f32 %v490_v28, %v490_v28  ;;  %v555_v38 = vsel %vm523_vm12, 0.0, %v539_v26 }
 0x1fa   : > { %v564_v15 = vadd.f32 %v563_v10, %v549_v7  ;;  %v509_v41 = vadd.s32 120, %v927_v36  ;;  %vm525_vm14 = vcmp.eq.s32.totalorder %v507_v29, %v930_v40  ;;  %v542_v43 = vmul.f32 %v491_v33, %v491_v33 }
 0x1fb   : > { %v556_v44 = vsel %vm524_vm13, 0.0, %v540_v31  ;;  %vm526_vm15 = vcmp.eq.s32.totalorder %v508_v34, %v930_v40  ;;  %v543_v46 = vmul.f32 %v492_v39, %v492_v39  ;;  %v557_v47 = vsel %vm525_vm14, 0.0, %v541_v37 }
 0x1fc   : > { %v565_v20 = vadd.f32 %v564_v15, %v550_v12  ;;  %vm527_vm0 = vcmp.eq.s32.totalorder %v509_v41, %v930_v40  ;;  %v558_v49 = vsel %vm526_vm15, 0.0, %v542_v43 }
 0x1fd   : > { %v559_v51 = vsel %vm527_vm0, 0.0, %v543_v46 }
 0x1fe   : > { %v566_v25 = vadd.f32 %v565_v20, %v551_v17 }
 0x200   : > { %v567_v30 = vadd.f32 %v566_v25, %v552_v22 }
 0x202   : > { %v568_v35 = vadd.f32 %v567_v30, %v553_v27 }
 0x204   : > { %v569_v42 = vadd.f32 %v568_v35, %v554_v32 }
 0x206   : > { %v570_v45 = vadd.f32 %v569_v42, %v555_v38 }
 0x208   : > { %v571_v48 = vadd.f32 %v570_v45, %v556_v44 }
 0x20a   : > { %v572_v50 = vadd.f32 %v571_v48, %v557_v47 }
 0x20c   : > { %v573_v52 = vadd.f32 %v572_v50, %v558_v49 }
 0x20e   : > { %v574_v53 = vadd.f32 %v573_v52, %v559_v51 }
 0x210   : > { %575 = vadd.xlane.f32.xlu0 %v574_v53 }
 0x299   : > { %v576_v36 = vpop.xlane.xlu0 %575 }
 0x29a   : > { %v577_v54 = vrot.slane %v576_v36, 4 }
 0x29c   : > { %v578_v55 = vadd.f32 %v577_v54, %v576_v36 }
 0x29e   : > { %v579_v56 = vrot.slane %v578_v55, 2 }
 0x2a0   : > { %v580_v57 = vadd.f32 %v579_v56, %v578_v55 }
 0x2a2   : > { %v581_v58 = vrot.slane %v580_v57, 1 }
 0x2a4   : > { %v582_v59 = vadd.f32 %v581_v58, %v580_v57 }
 0x2a6   : > { %726 = vpush %v582_v59 }
 0x2d7   : > { %s727_s18 = spop %726 }
 0x2d8   : > { %s586_s19 = smul.f32 0.0010080645, %s727_s18 }
 0x2da   : > { %s589_s20 = smul.f32 0.125, %s586_s19 }
 0x2dc   : > { %591 = sst [smem:[#allocation10]] %s589_s20 }
 0x2dd PF: > { %p742_p5 = scmp.eq.s32.totalorder %s648_s9, 1  ;;  %s846_s21 = smov [#allocation10]  }
 0x2df   : > { %733 = dma.smem_to_hbm (%p742_p5), %s846_s21, 16, %s978_s1, [#allocation9]  }
 0x2e0   : > { %828 = dma.done.wait (%p742_p5), [#allocation9], 16  }
 0x2e1   : > { %830 = vsyncadd (%p742_p5), [#allocation9], 4294967280 }
 0x2e2   : > { %605 = sfence }
 0x2e3 PF: > { %s13_s8 = sadd.s32 1, %s841_s8   ;;  %s981_s6 = smov %s837_s7 }
 0x2e4   : > { %p10_p6 = scmp.ge.s32.totalorder %s13_s8, 4   ;;  %s982_s7 = smov %s984_s10 }
 0x2e6   :  { %12 = sbr.rel (!%p10_p6) target bundleno = 3 (0x3), region = 75 }
 0x2eb   :  { %611 = vsyncpa [#allocation8], 1 }
 0x2ec   :  { %613 = vsyncpa [#allocation8 + $0x1], 1 }
 0x2ed   :  { %614 = vsyncpa [#allocation9], 1 }
 0x2ee   :  { %616 = vsyncpa [#allocation9 + $0x1], 1 }

</bundles_post_ra>
